<compile_context>
chip_gen: v6e
topology: v6e:2x2x1
jax: 0.10.0
libtpu: 0.0.40
codegen_flags: <defaults>
</compile_context>

<pallas_src>
import functools

import jax
import jax.numpy as jnp
from jax import lax
from jax.experimental import pallas as pl
from jax.experimental.pallas import tpu as pltpu

# Synthetic config. Only backbone='densenet169' is reachable in the reference module
# (the resnet50 branch falls into the `else: raise`), so we implement that path:
# features -> adaptive_avg_pool2d((1,1)) -> Flatten -> Linear(F, 1) -> masked prob_mean.
NUM_FEATURES = 32     # stands in for densenet169's 1664 classifier.in_features
IN_CHANNELS = 4
IMG_HW = 16

HP = IMG_HW + 2                     # spatially padded height (SAME halo)          = 18
KIN = (IMG_HW + 2) * IN_CHANNELS    # padded width * channels folded into lanes    = 72
WF = IMG_HW * NUM_FEATURES          # conv-output lanes per image row: W * F       = 512
LANES = 128                         # per-step logits written as one lane-dense row


def _choose_nb(n):
    """Images per grid step.

    Big blocks amortize per-step pipeline overhead (v6e/v5e), but keep at least 2 grid
    steps whenever possible so dimension_semantics=('parallel',) can shard the image
    axis across v7x's two TensorCores (demo batch: N=6 -> NB=4 -> grid=(2,)).
    """
    for nb in (64, 32, 16, 8):
        if n >= 2 * nb:
            return nb
    return 4


# ---------------------------------------------------------------------------
# Kernel 1 (fused): 3x3 SAME conv + ReLU + global-avg-pool + Linear(F, 1).
# TODO(synk): the real module uses a full pretrained DenseNet-169 backbone; a single
# deterministic conv3x3+ReLU layer stands in for its feature extractor here.
# ---------------------------------------------------------------------------
def _fused_conv_gap_fc_kernel(x_ref, wt_ref, bconv_ref, wfc_ref, bfc_ref, o_ref, *, nb):
    # x_ref:     (nb, HP, KIN)   f32   spatially padded images, (W, C) folded into lanes
    # wt_ref:    (3, KIN, WF)    bf16  banded/Toeplitz conv weights, one slab per dy
    # bconv_ref: (1, WF)         f32   conv bias tiled over the W lane groups
    # wfc_ref:   (1, WF)         f32   classifier weight tiled over the W lane groups
    # bfc_ref:   (1, 1)          f32   classifier bias
    # o_ref:     (1, 1, LANES)   f32   per-image logits of this block; lane j = image j
    m = nb * IMG_HW
    acc = jnp.zeros((m, WF), jnp.float32)
    # 3x3 SAME conv as 3 accumulated MXU matmuls: for kernel row dy, rows [dy, dy+16)
    # of the padded image are contracted (over the 72 (W+2)*C lanes) against a banded
    # (KIN, W*F) weight that realizes the dx shifts.
    for dy in range(3):                                        # static unroll
        rows = x_ref[:, dy:dy + IMG_HW, :]                     # (nb, 16, KIN) f32
        lhs = rows.reshape(m, KIN).astype(jnp.bfloat16)
        acc = acc + jnp.dot(lhs, wt_ref[dy], preferred_element_type=jnp.float32)
    feat = jnp.maximum(acc + bconv_ref[...], 0.0)              # conv bias + ReLU

    # GAP + Linear: reduce over h BEFORE multiplying by the classifier weight.
    pooled = jnp.sum(feat.reshape(nb, IMG_HW, WF), axis=1)     # (nb, WF)  sum over h
    weighted = pooled * wfc_ref[...]                           # single-vreg-wide multiply
    per_img = jnp.sum(weighted, axis=1, keepdims=True)         # (nb, 1)   sum over w, f
    per_img = per_img * (1.0 / (IMG_HW * IMG_HW)) + bfc_ref[...]

    # Scatter the nb per-image scalars into one lane-dense (1, LANES) output row.
    lane = lax.broadcasted_iota(jnp.int32, (nb, LANES), 1)
    row = lax.broadcasted_iota(jnp.int32, (nb, LANES), 0)
    sel = (lane == row).astype(jnp.float32)
    o_ref[...] = jnp.sum(per_img * sel, axis=0, keepdims=True).reshape(1, 1, LANES)


def fused_image_logits(x_folded, w_toep, b_tiled, wfc_tiled, bfc, nb):
    n_pad = x_folded.shape[0]
    steps = n_pad // nb
    kernel = functools.partial(_fused_conv_gap_fc_kernel, nb=nb)
    out = pl.pallas_call(
        kernel,
        out_shape=jax.ShapeDtypeStruct((steps, 1, LANES), jnp.float32),
        grid=(steps,),
        in_specs=[
            pl.BlockSpec((nb, HP, KIN), lambda i: (i, 0, 0)),    # raw padded images
            pl.BlockSpec((3, KIN, WF), lambda i: (0, 0, 0)),     # conv weights (resident)
            pl.BlockSpec((1, WF), lambda i: (0, 0)),             # conv bias (tiled)
            pl.BlockSpec((1, WF), lambda i: (0, 0)),             # fc weight (tiled)
            pl.BlockSpec((1, 1), lambda i: (0, 0)),              # fc bias
        ],
        out_specs=pl.BlockSpec((1, 1, LANES), lambda i: (i, 0, 0)),
        compiler_params=pltpu.CompilerParams(
            dimension_semantics=("parallel",),
            vmem_limit_bytes=32 * 1024 * 1024,   # footprint <4 MiB even at NB=64; v5e-safe
        ),
    )(x_folded, w_toep, b_tiled, wfc_tiled, bfc)
    # Unpack the lane-dense per-step rows back to a flat (n_pad,) logit vector.
    return out.reshape(steps, LANES)[:, :nb].reshape(steps * nb)


# ---------------------------------------------------------------------------
# Kernel 2: masked 'prob_mean' study aggregation (sigmoid / masked mean / clamp / logit).
# Matches the PyTorch code verbatim: padded within-study slots have their logits zeroed
# by the mask, so they contribute sigmoid(0)=0.5 to the sum before dividing by the number
# of *real* images — exactly what the reference forward() does.
# ---------------------------------------------------------------------------
def _agg_prob_mean_kernel(logits_ref, mask_ref, o_ref):
    # logits_ref, mask_ref: (B, M); o_ref: (B, 1)
    logits = logits_ref[...] * mask_ref[...]            # batch_logits * masks
    probs = jax.nn.sigmoid(logits)
    n_real = jnp.sum(mask_ref[...], axis=1, keepdims=True)
    p = jnp.sum(probs, axis=1, keepdims=True) / n_real   # exact division (review note)
    p = jnp.clip(p, 1e-6, 1.0 - 1e-6)
    o_ref[...] = jnp.log(p) - jnp.log(1.0 - p)


def agg_prob_mean(logits_bm, masks_bm):
    B = logits_bm.shape[0]
    return pl.pallas_call(
        _agg_prob_mean_kernel,
        out_shape=jax.ShapeDtypeStruct((B, 1), jnp.float32),
    )(logits_bm, masks_bm)


# ---------------------------------------------------------------------------
# Glue: padding / masking / weight folding (pure-JAX), params, forward, reference.
# ---------------------------------------------------------------------------
def init_params(key):
    k1, k2, k3 = jax.random.split(key, 3)
    return dict(
        w_conv=0.1 * jax.random.normal(k1, (3, 3, IN_CHANNELS, NUM_FEATURES), jnp.float32),
        b_conv=0.01 * jax.random.normal(k2, (NUM_FEATURES,), jnp.float32),
        w_fc=0.1 * jax.random.normal(k3, (NUM_FEATURES, 1), jnp.float32),
        b_fc=jnp.zeros((1,), jnp.float32),
    )


def _pad_and_mask(x_list):
    B = len(x_list)
    M = max(int(x.shape[0]) for x in x_list)
    C, H, W = x_list[0].shape[1:]
    padded, masks = [], []
    for study in x_list:
        n = int(study.shape[0])
        mask = jnp.zeros((M,), jnp.float32).at[:n].set(1.0)
        pad = jnp.zeros((M - n, C, H, W), jnp.float32)
        padded.append(jnp.concatenate([study, pad], axis=0)[None])
        masks.append(mask[None])
    padded_batch = jnp.concatenate(padded, axis=0)          # (B, M, C, H, W)
    masks = jnp.concatenate(masks, axis=0)                  # (B, M)
    return padded_batch.reshape(B * M, C, H, W), masks, B, M


def _fold_images(batch_images_nchw, nb):
    """(N, C, H, W) -> (n_pad, H+2, (W+2)*C) f32: NHWC, SAME halo, (W,C) folded to lanes."""
    x = jnp.transpose(batch_images_nchw, (0, 2, 3, 1))          # NCHW -> NHWC
    x = jnp.pad(x, ((0, 0), (1, 1), (1, 1), (0, 0)))            # 1-pixel zero halo
    N, Hp, Wp, C = x.shape
    x = x.reshape(N, Hp, Wp * C)
    n_pad = ((N + nb - 1) // nb) * nb
    return jnp.pad(x, ((0, n_pad - N), (0, 0), (0, 0))), n_pad


def _toeplitz_conv_weights(w_conv):
    """(3, 3, C, F) HWIO conv weights -> (3, KIN, WF) banded matmul weights (bf16).

    w_toep[dy, w_in*C + c, w_out*F + f] = w_conv[dy, w_in - w_out, c, f]
    when 0 <= w_in - w_out <= 2, else 0 — so for each kernel row dy, the conv over the
    (padded) width axis is one (KIN x WF) MXU matmul.
    """
    W, C, F = IMG_HW, IN_CHANNELS, NUM_FEATURES
    w_in = jnp.arange(W + 2)
    w_out = jnp.arange(W)
    dx = w_in[:, None] - w_out[None, :]                          # (W+2, W)
    valid = ((dx >= 0) & (dx <= 2)).astype(w_conv.dtype)
    gathered = w_conv[:, jnp.clip(dx, 0, 2)]                     # (3, W+2, W, C, F)
    gathered = gathered * valid[None, :, :, None, None]
    w_toep = jnp.transpose(gathered, (0, 1, 3, 2, 4)).reshape(3, (W + 2) * C, W * F)
    return w_toep.astype(jnp.bfloat16)


def mura_forward(x_list, params):
    """x_list: list of NCHW arrays (num_images_i, C, H, W). Returns (B, 1) logits."""
    batch_images, masks, B, M = _pad_and_mask(x_list)
    N = B * M
    nb = _choose_nb(N)
    x_folded, _ = _fold_images(batch_images, nb)                 # (n_pad, 18, 72) f32

    w_toep = _toeplitz_conv_weights(params["w_conv"])            # (3, 72, 512) bf16
    b_tiled = jnp.tile(params["b_conv"], IMG_HW).reshape(1, WF)
    wfc_tiled = jnp.tile(params["w_fc"][:, 0], IMG_HW).reshape(1, WF)
    bfc = params["b_fc"].reshape(1, 1)

    logits = fused_image_logits(x_folded, w_toep, b_tiled, wfc_tiled, bfc, nb)  # (n_pad,)
    logits_bm = logits[:N].reshape(B, M)
    return agg_prob_mean(logits_bm, masks)                        # (B, 1)


def mura_forward_ref(x_list, params):
    batch_images, masks, B, M = _pad_and_mask(x_list)
    x = jnp.transpose(batch_images, (0, 2, 3, 1))
    feats = lax.conv_general_dilated(
        x, params["w_conv"], (1, 1), "SAME",
        dimension_numbers=("NHWC", "HWIO", "NHWC"))
    feats = jnp.maximum(feats + params["b_conv"], 0.0)
    pooled = jnp.mean(feats, axis=(1, 2))
    logits = pooled @ params["w_fc"] + params["b_fc"]
    logits = logits.reshape(B, M) * masks
    probs = jax.nn.sigmoid(logits)
    p = probs.sum(axis=1, keepdims=True) / masks.sum(axis=1, keepdims=True)
    p = jnp.clip(p, 1e-6, 1.0 - 1e-6)
    return jnp.log(p / (1.0 - p))


if __name__ == "__main__":
    key = jax.random.PRNGKey(0)
    kp, k0, k1 = jax.random.split(key, 3)
    params = init_params(kp)

    # Two studies with different numbers of images (NCHW, like PyTorch).
    study0 = jax.random.normal(k0, (3, IN_CHANNELS, IMG_HW, IMG_HW), jnp.float32)
    study1 = jax.random.normal(k1, (2, IN_CHANNELS, IMG_HW, IMG_HW), jnp.float32)
    x_list = [study0, study1]

    out = mura_forward(x_list, params)
    out = jax.block_until_ready(out)

    ref = mura_forward_ref(x_list, params)
    assert out.shape == (2, 1), out.shape
    # bf16 MXU operands vs f32 reference -> ~1e-3 logit error; 1e-2 tolerance documents it.
    assert bool(jnp.allclose(out, ref, atol=1e-2, rtol=1e-2)), (out, ref)
    print("KERNEL_OK")
</pallas_src>

<mosaic_0001>
module attributes {stable_mosaic.version = 11 : i64} {
  func.func @_fused_conv_gap_fc_kernel(%arg0: i32, %arg1: memref<4x18x72xf32, #tpu.memory_space<vmem>>, %arg2: memref<3x72x512xbf16, #tpu.memory_space<vmem>>, %arg3: memref<1x512xf32, #tpu.memory_space<vmem>>, %arg4: memref<1x512xf32, #tpu.memory_space<vmem>>, %arg5: memref<1x1xf32, #tpu.memory_space<vmem>>, %arg6: memref<1x1x128xf32, #tpu.memory_space<vmem>>) attributes {dimension_semantics = [#tpu.dimension_semantics<parallel>], iteration_bounds = array<i64: 2>, scalar_prefetch = 0 : i64, scratch_operands = 0 : i64, tpu.core_type = #tpu.core_type<tc>, window_params = [{transform_indices = @transform_0, window_bounds = array<i64: 4, 18, 72>}, {pipeline_mode = #tpu.pipeline_mode<synchronous>, transform_indices = @transform_1, window_bounds = array<i64: 3, 72, 512>}, {pipeline_mode = #tpu.pipeline_mode<synchronous>, transform_indices = @transform_2, window_bounds = array<i64: 1, 512>}, {pipeline_mode = #tpu.pipeline_mode<synchronous>, transform_indices = @transform_3, window_bounds = array<i64: 1, 512>}, {pipeline_mode = #tpu.pipeline_mode<synchronous>, transform_indices = @transform_4, window_bounds = array<i64: 1, 1>}, {transform_indices = @transform_5, window_bounds = array<i64: 1, 1, 128>}]} {
    %cst = arith.constant 0.000000e+00 : f32
    %0 = vector.broadcast %cst : f32 to vector<64x512xf32>
    %c0 = arith.constant 0 : index
    %c0_0 = arith.constant 0 : index
    %c0_1 = arith.constant 0 : index
    %1 = vector.load %arg1[%c0, %c0_0, %c0_1] : memref<4x18x72xf32, #tpu.memory_space<vmem>>, vector<4x16x72xf32>
    %2 = vector.shape_cast %1 : vector<4x16x72xf32> to vector<64x72xf32>
    %3 = arith.truncf %2 : vector<64x72xf32> to vector<64x72xbf16>
    %c0_2 = arith.constant 0 : index
    %c0_3 = arith.constant 0 : index
    %c0_4 = arith.constant 0 : index
    %4 = vector.load %arg2[%c0_2, %c0_3, %c0_4] : memref<3x72x512xbf16, #tpu.memory_space<vmem>>, vector<1x72x512xbf16>
    %5 = vector.shape_cast %4 : vector<1x72x512xbf16> to vector<72x512xbf16>
    %cst_5 = arith.constant dense<0.000000e+00> : vector<64x512xf32>
    %6 = tpu.matmul %3, %5, %cst_5 {dimension_numbers = #tpu.dot_dimension_numbers<[1], [0], [0], [1], [0, 0, 1, 1], [], []>} : vector<64x72xbf16>, vector<72x512xbf16>, vector<64x512xf32> -> vector<64x512xf32>
    %7 = arith.addf %0, %6 : vector<64x512xf32>
    %c0_6 = arith.constant 0 : index
    %c1 = arith.constant 1 : index
    %c0_7 = arith.constant 0 : index
    %8 = vector.load %arg1[%c0_6, %c1, %c0_7] : memref<4x18x72xf32, #tpu.memory_space<vmem>>, vector<4x16x72xf32>
    %9 = vector.shape_cast %8 : vector<4x16x72xf32> to vector<64x72xf32>
    %10 = arith.truncf %9 : vector<64x72xf32> to vector<64x72xbf16>
    %c1_8 = arith.constant 1 : index
    %c0_9 = arith.constant 0 : index
    %c0_10 = arith.constant 0 : index
    %11 = vector.load %arg2[%c1_8, %c0_9, %c0_10] : memref<3x72x512xbf16, #tpu.memory_space<vmem>>, vector<1x72x512xbf16>
    %12 = vector.shape_cast %11 : vector<1x72x512xbf16> to vector<72x512xbf16>
    %cst_11 = arith.constant dense<0.000000e+00> : vector<64x512xf32>
    %13 = tpu.matmul %10, %12, %cst_11 {dimension_numbers = #tpu.dot_dimension_numbers<[1], [0], [0], [1], [0, 0, 1, 1], [], []>} : vector<64x72xbf16>, vector<72x512xbf16>, vector<64x512xf32> -> vector<64x512xf32>
    %14 = arith.addf %7, %13 : vector<64x512xf32>
    %c0_12 = arith.constant 0 : index
    %c2 = arith.constant 2 : index
    %c0_13 = arith.constant 0 : index
    %15 = vector.load %arg1[%c0_12, %c2, %c0_13] : memref<4x18x72xf32, #tpu.memory_space<vmem>>, vector<4x16x72xf32>
    %16 = vector.shape_cast %15 : vector<4x16x72xf32> to vector<64x72xf32>
    %17 = arith.truncf %16 : vector<64x72xf32> to vector<64x72xbf16>
    %c2_14 = arith.constant 2 : index
    %c0_15 = arith.constant 0 : index
    %c0_16 = arith.constant 0 : index
    %18 = vector.load %arg2[%c2_14, %c0_15, %c0_16] : memref<3x72x512xbf16, #tpu.memory_space<vmem>>, vector<1x72x512xbf16>
    %19 = vector.shape_cast %18 : vector<1x72x512xbf16> to vector<72x512xbf16>
    %cst_17 = arith.constant dense<0.000000e+00> : vector<64x512xf32>
    %20 = tpu.matmul %17, %19, %cst_17 {dimension_numbers = #tpu.dot_dimension_numbers<[1], [0], [0], [1], [0, 0, 1, 1], [], []>} : vector<64x72xbf16>, vector<72x512xbf16>, vector<64x512xf32> -> vector<64x512xf32>
    %21 = arith.addf %14, %20 : vector<64x512xf32>
    %c0_18 = arith.constant 0 : index
    %c0_19 = arith.constant 0 : index
    %22 = vector.load %arg3[%c0_18, %c0_19] : memref<1x512xf32, #tpu.memory_space<vmem>>, vector<1x512xf32>
    %23 = vector.broadcast %22 : vector<1x512xf32> to vector<64x512xf32>
    %24 = arith.addf %21, %23 : vector<64x512xf32>
    %cst_20 = arith.constant 0.000000e+00 : f32
    %25 = vector.broadcast %cst_20 : f32 to vector<64x512xf32>
    %26 = arith.maximumf %24, %25 : vector<64x512xf32>
    %27 = vector.shape_cast %26 : vector<64x512xf32> to vector<4x16x512xf32>
    %cst_21 = arith.constant dense<0.000000e+00> : vector<4x512xf32>
    %28 = vector.multi_reduction <add>, %27, %cst_21 [1] : vector<4x16x512xf32> to vector<4x512xf32>
    %c0_22 = arith.constant 0 : index
    %c0_23 = arith.constant 0 : index
    %29 = vector.load %arg4[%c0_22, %c0_23] : memref<1x512xf32, #tpu.memory_space<vmem>>, vector<1x512xf32>
    %30 = vector.broadcast %29 : vector<1x512xf32> to vector<4x512xf32>
    %31 = arith.mulf %28, %30 : vector<4x512xf32>
    %cst_24 = arith.constant dense<0.000000e+00> : vector<4xf32>
    %32 = vector.multi_reduction <add>, %31, %cst_24 [1] : vector<4x512xf32> to vector<4xf32>
    %33 = vector.shape_cast %32 : vector<4xf32> to vector<4x1xf32>
    %cst_25 = arith.constant 3.906250e-03 : f32
    %34 = vector.broadcast %cst_25 : f32 to vector<4x1xf32>
    %35 = arith.mulf %33, %34 : vector<4x1xf32>
    %c0_26 = arith.constant 0 : index
    %c0_27 = arith.constant 0 : index
    %36 = vector.load %arg5[%c0_26, %c0_27] : memref<1x1xf32, #tpu.memory_space<vmem>>, vector<1x1xf32>
    %37 = vector.broadcast %36 : vector<1x1xf32> to vector<4x1xf32>
    %38 = arith.addf %35, %37 : vector<4x1xf32>
    %39 = tpu.iota {dimensions = array<i32: 1>} : vector<4x128xi32>
    %40 = tpu.iota {dimensions = array<i32: 0>} : vector<4x128xi32>
    %41 = arith.cmpi eq, %39, %40 : vector<4x128xi32>
    %42 = arith.extui %41 : vector<4x128xi1> to vector<4x128xi32>
    %43 = arith.sitofp %42 : vector<4x128xi32> to vector<4x128xf32>
    %44 = vector.broadcast %38 : vector<4x1xf32> to vector<4x128xf32>
    %45 = arith.mulf %44, %43 : vector<4x128xf32>
    %cst_28 = arith.constant dense<0.000000e+00> : vector<128xf32>
    %46 = vector.multi_reduction <add>, %45, %cst_28 [0] : vector<4x128xf32> to vector<128xf32>
    %47 = vector.shape_cast %46 : vector<128xf32> to vector<1x128xf32>
    %48 = vector.shape_cast %47 : vector<1x128xf32> to vector<1x1x128xf32>
    %c0_29 = arith.constant 0 : index
    %c0_30 = arith.constant 0 : index
    %c0_31 = arith.constant 0 : index
    %49 = vector.load %arg6[%c0_29, %c0_30, %c0_31] : memref<1x1x128xf32, #tpu.memory_space<vmem>>, vector<1x1x128xf32>
    tpu.vector_store %arg6[%c0_29, %c0_30, %c0_31], %48 {strides = array<i32>} : memref<1x1x128xf32, #tpu.memory_space<vmem>>, vector<1x1x128xf32>,
    return
  }
  func.func @transform_0(%arg0: i32) -> (i32, i32, i32) {
    %c0_i32 = arith.constant 0 : i32
    %c0_i32_0 = arith.constant 0 : i32
    %c0_i32_1 = arith.constant 0 : i32
    return %arg0, %c0_i32, %c0_i32_0 : i32, i32, i32
  }
  func.func @transform_1(%arg0: i32) -> (i32, i32, i32) {
    %c0_i32 = arith.constant 0 : i32
    %c0_i32_0 = arith.constant 0 : i32
    %c0_i32_1 = arith.constant 0 : i32
    %c0_i32_2 = arith.constant 0 : i32
    return %c0_i32, %c0_i32_0, %c0_i32_1 : i32, i32, i32
  }
  func.func @transform_2(%arg0: i32) -> (i32, i32) {
    %c0_i32 = arith.constant 0 : i32
    %c0_i32_0 = arith.constant 0 : i32
    %c0_i32_1 = arith.constant 0 : i32
    return %c0_i32, %c0_i32_0 : i32, i32
  }
  func.func @transform_3(%arg0: i32) -> (i32, i32) {
    %c0_i32 = arith.constant 0 : i32
    %c0_i32_0 = arith.constant 0 : i32
    %c0_i32_1 = arith.constant 0 : i32
    return %c0_i32, %c0_i32_0 : i32, i32
  }
  func.func @transform_4(%arg0: i32) -> (i32, i32) {
    %c0_i32 = arith.constant 0 : i32
    %c0_i32_0 = arith.constant 0 : i32
    %c0_i32_1 = arith.constant 0 : i32
    return %c0_i32, %c0_i32_0 : i32, i32
  }
  func.func @transform_5(%arg0: i32) -> (i32, i32, i32) {
    %c0_i32 = arith.constant 0 : i32
    %c0_i32_0 = arith.constant 0 : i32
    %c0_i32_1 = arith.constant 0 : i32
    return %arg0, %c0_i32, %c0_i32_0 : i32, i32, i32
  }
}

</mosaic_0001>

<bundles_post_ra>
// kernel: tpu_custom_call.1
= control target key start
LH: loop header
LB: loop body
LE: loop exit
PB: predicated region body
PF: predicated region fallthrough
CT: control target
= control target key end

     0   :  { %s2406_s0 = inlined_call_operand.vmem [shape: f32[8,18,72], index: 0, kind: input, shape index: {}]   ;;  %s2407_s1 = inlined_call_operand.hbm [shape: bf16[3,72,512], index: 1, kind: input, shape index: {}]   ;;  %s2408_s2 = inlined_call_operand.vmem [shape: f32[1,512], index: 2, kind: input, shape index: {}]   ;;  %s2409_s3 = inlined_call_operand.vmem [shape: f32[1,512], index: 3, kind: input, shape index: {}]   ;;  %s2410_s4 = inlined_call_operand.<no memory space> [shape: f32[1,1], index: 4, kind: input, shape index: {}]   ;;  %s2411_s5 = inlined_call_operand.hbm [shape: f32[2,1,128], index: 5, kind: output, shape index: {}]  }
   0x1   :  { %v10_v0 = vstv %s2410_s4 }
   0x2   :  { %11 = vst [vmem:[#allocation2] sm:$0x1] %v10_v0 }
   0x3   :  { %12 = vsyncpa [#allocation4], 0 }
   0x4   :  { %13 = vsyncpa [#allocation5], 0 }
   0x5   :  { %15 = vsyncpa [#allocation5 + $0x1], 0  ;;  %s1927_s20 = smov 0   ;;  %s1929_s21 = smov 0  }
   0x6   :  { %s1931_s22 = smov 0   ;;  %s1933_s23 = smov 0  }
   0x7 LB: > { %s1948_s4 = sadd.s32 4294967295, %s1886_s23   ;;  %s1553_s24 = sadd.s32 4294967294, %s1886_s23   ;;  %s1886_s23 = sphi %s1933_s23, %s2466_s23   ;;  %s1882_s22 = sphi %s1931_s22, %s2465_s22   ;;  %s1878_s21 = sphi %s1929_s21, %s2464_s21   ;;  %s1874_s20 = sphi %s1927_s20, %s2463_s20  }
   0x8   : > { %s1952_s25 = sadd.s32 1, %s1886_s23   ;;  %s138_s26 = sadd.s32 1, %s1882_s22 }
   0x9   : > { %s135_s27 = ssub.s32 %s1886_s23, %s1952_s25  ;;  %p148_p0 = scmp.ne.s32.totalorder %s1882_s22, %s1878_s21 }
   0xa   : > { %p136_p1 = scmp.eq.s32.totalorder %s135_s27, 0  ;;  %p149_p2 = scmp.eq.s32.totalorder %s1948_s4, 1 }
   0xb   : > { %p154_p3 = scmp.ne.s32.totalorder %s1878_s21, %s1874_s20  ;;  %p155_p4 = scmp.eq.s32.totalorder %s1553_s24, 1 }
   0xc   : > { %s1963_s28 = scalar_select %p136_p1, %s1882_s22, %s138_s26  }
   0xd   : > { %p1965_p5 = por %p149_p2, %p148_p0  ;;  %p1969_p6 = por %p155_p4, %p154_p3 }
   0xe   : > { %p1554_p7 = scmp.ge.s32.totalorder %s1886_s23, 1  ;;  %p162_p8 = scmp.lt.s32.totalorder %s1886_s23, 3 }
   0xf   : > { %s2420_s30 = scalar_select %p1969_p6, 1, 0 }
  0x10   : > { %p1671_p9 = scmp.eq.s32.totalorder %s1948_s4, 0  ;;  %p1976_p10 = pnand %p1554_p7, %p162_p8 }
  0x11   : > { %s1888_s7 = smov [#allocation3]  }
  0x12   : > { %s174_s8 = sshll.u32 %s1888_s7, 4  ;;  %p1663_p11 = pneg %p1976_p10  ;;  %s175_s8 = int_to_ptr.vmem [resolvable:$true] %s174_s8 }
  0x13   : > { %s1807_s9 = scalar_lea.vmem %s175_s8, 6912  ;;  %p1815_p3 = scmp.lt.s32.totalorder %s175_s8, %s175_s8 }
  0x14   : > { %p1664_p12 = pnand %p1671_p9, %p1663_p11  ;;  %p1808_p0 = scmp.ne.s32.totalorder %s175_s8, %s1807_s9 }
  0x15   : > { %p1816_p4 = scmp.lt.s32.totalorder %s1807_s9, %s1807_s9 }
  0x16   : > { %p1798_p13 = pneg %p1664_p12 }
  0x17   : > { %p1817_p6 = por %p1816_p4, %p1815_p3 }
  0x18   : > { %p1810_p1 = pnand %p1808_p0, %p1798_p13 }
  0x1a   : > { %p1811_p2 = pneg %p1810_p1 }
  0x1c   : > { %p1818_p7 = pnand %p1817_p6, %p1811_p2 }
  0x1e   : > { %1821 = shalt.err (!%p1818_p7)
}
  0x1f   : > { %s1889_s10 = smov 256   ;;  %s1890_s11 = smov 16  }
  0x20   : > { %1666 = dma.hbm_to_vmem [thread:$0]  (!%p1664_p12), %s2407_s1, 6912, %s175_s8, [#allocation4], %s1889_s10, %s1889_s10, %s1890_s11  }
  0x21   : > { %209 = sbr.rel (%p1976_p10) target bundleno = 689 (0x2b1), region = 40 }
  0x26   : > { %1865 = dma.done.wait (%p1671_p9), [#allocation4], 6912  }
  0x27   : > { %1867 = vsyncadd (%p1671_p9), [#allocation4], 4294960384  ;;  %v1891_v1 = vmov 0   ;;  %s1559_s14 = sshll.u32 %s1948_s4, 2  ;;  %v304_v2 = vld [vmem:[#allocation3 + $0x110] sm:$0xff]  ;;  %vm409_vm0 = vcmask 1043456  }
  0x28   : > { %454 = vmatprep.mubr.bf16.mxu0 %v1891_v1  ;;  %527 = vmatprep.mubr.bf16.mxu1 %v1891_v1  ;;  %v305_v3 = vld [vmem:[#allocation3 + $0x118] sm:$0xff]  ;;  %p1997_p6 = scmp.lt.s32.totalorder %s1559_s14, 7  ;;  %v1578_v4 = vcombine.high %v304_v2, %v304_v2  ;;  %v1577_v6 = vcombine.low %v304_v2, %v304_v2  ;;  %v1716_v8 = vld [vmem:[#allocation3 + $0xf4] ss:$16 sps:$4 sm:$0xff]   ;;  %v1720_v12 = vld [vmem:[#allocation3 + $0xf0] ss:$16 sps:$4 sm:$0xff]  }
  0x29   : > { %1711 = vset.pattern.permute.xlu0 %v1891_v1  ;;  %v1580_v5 = vcombine.high %v305_v3, %v305_v3  ;;  %v1579_v7 = vcombine.low %v305_v3, %v305_v3  ;;  %v1718_v9 = vld [vmem:[#allocation3 + $0xfc] ss:$16 sps:$4 sm:$0xff]   ;;  %v1721_v13 = vld [vmem:[#allocation3 + $0xf8] ss:$16 sps:$4 sm:$0xff]   ;;  %v1722_v14 = vld [vmem:[#allocation3 + $0xd4] ss:$16 sps:$4 sm:$0xff]  }
  0x2a   : > { %1581 = vmatprep.subr.msk.bf16.mxu0 %vm409_vm0, %v1578_v4  ;;  %v411_v10 = vsel %vm409_vm0, %v1577_v6, 0  ;;  %s2468_s14 = smov (!%p1997_p6, %s1559_s14), 7  ;;  %v1724_v15 = vld [vmem:[#allocation3 + $0xdc] ss:$16 sps:$4 sm:$0xff]   ;;  %v1726_v16 = vld [vmem:[#allocation3 + $0xd0] ss:$16 sps:$4 sm:$0xff]  }
  0x2b   : > { %1586 = vmatprep.subr.msk.bf16.mxu1 %vm409_vm0, %v1580_v5  ;;  %v417_v11 = vsel %vm409_vm0, %v1579_v7, 0  ;;  %429 = vmatpush1.bf16.msra.mxu0 %v411_v10  ;;  %v1727_v17 = vld [vmem:[#allocation3 + $0xd8] ss:$16 sps:$4 sm:$0xff]   ;;  %v1728_v18 = vld [vmem:[#allocation3 + $0xb4] ss:$16 sps:$4 sm:$0xff]   ;;  %s1656_s16 = smul.u32 24, %s2468_s14 }
  0x2c   : > { %502 = vmatpush1.bf16.msra.mxu1 %v417_v11  ;;  %430 = vmatprep.subr.bf16.mxu0 %v1716_v8  ;;  %v1730_v19 = vld [vmem:[#allocation3 + $0xbc] ss:$16 sps:$4 sm:$0xff]   ;;  %v1732_v20 = vld [vmem:[#allocation3 + $0xb0] ss:$16 sps:$4 sm:$0xff]   ;;  %v1733_v21 = vld [vmem:[#allocation3 + $0xb8] ss:$16 sps:$4 sm:$0xff]  }
  0x2d   : > { %503 = vmatprep.subr.bf16.mxu1 %v1718_v9  ;;  %v1734_v22 = vld [vmem:[#allocation3 + $0x94] ss:$16 sps:$4 sm:$0xff]   ;;  %s2010_s19 = scalar_lea.vmem %s2406_s0, %s1656_s16  ;;  %v1736_v23 = vld [vmem:[#allocation3 + $0x9c] ss:$16 sps:$4 sm:$0xff]   ;;  %v1738_v25 = vld [vmem:[#allocation3 + $0x90] ss:$16 sps:$4 sm:$0xff]  }
  0x2e   : > { %v273_v24 = vld [vmem:[#allocation3 + $0x80] sm:$0xff]  ;;  %v274_v26 = vld [vmem:[#allocation3 + $0x88] sm:$0xff]  ;;  %vm396_vm1 = vcmask 588800   ;;  %v277_v40 = vld [vmem:[%s2010_s19 + $0x19] sm:$0xff]  ;;  %vm1404_vm2 = vcmask 1041409   ;;  %vm1407_vm3 = vcmask 1042434  }
  0x2f   : > { %431 = vmatpush1.bf16.msra.mxu0 %v1720_v12  ;;  %v1739_v27 = vld [vmem:[#allocation3 + $0x98] ss:$16 sps:$4 sm:$0xff]   ;;  %v275_v28 = vld [vmem:[%s2010_s19 + $0x1] sm:$0xff]  ;;  %v1608_v30 = vcombine.high %v273_v24, %v273_v24  ;;  %v1607_v31 = vcombine.low %v273_v24, %v273_v24  ;;  %v1610_v32 = vcombine.high %v274_v26, %v274_v26  ;;  %v1609_v33 = vcombine.low %v274_v26, %v274_v26  ;;  %v1749_v39 = vld [vmem:[#allocation3 + $0x6c] ss:$16 sps:$4 sm:$0xff]   ;;  %s235_s7 = sand.u32 1, %s1878_s21  }
  0x30   : > { %504 = vmatpush1.bf16.msra.mxu1 %v1721_v13  ;;  %432 = vmatprep.subr.bf16.mxu0 %v1722_v14  ;;  %v276_v29 = vld [vmem:[%s2010_s19 + $0x9] sm:$0xff]  ;;  %v1744_v37 = vld [vmem:[#allocation3 + $0x60] ss:$16 sps:$4 sm:$0xff]   ;;  %v1746_v38 = vld [vmem:[#allocation3 + $0x64] ss:$16 sps:$4 sm:$0xff]   ;;  %vm1410_vm4 = vcmask 1043459  }
  0x31   : > { %505 = vmatprep.subr.bf16.mxu1 %v1724_v15  ;;  %v283_v34 = vpack.c.bf16 %v276_v29, %v275_v28  ;;  %v671_v35 = vsel %vm409_vm0, %v1607_v31, 0  ;;  %v677_v36 = vsel %vm409_vm0, %v1609_v33, 0  ;;  %v278_v41 = vld [vmem:[%s2010_s19 + $0x21] sm:$0xff]  ;;  %v1747_v42 = vld [vmem:[#allocation3 + $0x68] ss:$16 sps:$4 sm:$0xff]   ;;  %v279_v50 = vld [vmem:[%s2010_s19 + $0x31] sm:$0xff] }
  0x32   : > { %v1752_v43 = vld [vmem:[#allocation3 + $0x44] ss:$16 sps:$4 sm:$0xff]   ;;  %v1755_v44 = vld [vmem:[#allocation3 + $0x4c] ss:$16 sps:$4 sm:$0xff]   ;;  %v284_v45 = vpack.c.bf16 %v278_v41, %v277_v40  ;;  %v1750_v46 = vld [vmem:[#allocation3 + $0x40] ss:$16 sps:$4 sm:$0xff]  }
  0x33   : > { %433 = vmatpush1.bf16.msra.mxu0 %v1726_v16  ;;  %v1753_v47 = vld [vmem:[#allocation3 + $0x48] ss:$16 sps:$4 sm:$0xff]   ;;  %v1758_v48 = vld [vmem:[#allocation3 + $0x24] ss:$16 sps:$4 sm:$0xff]   ;;  %v1761_v49 = vld [vmem:[#allocation3 + $0x2c] ss:$16 sps:$4 sm:$0xff]  }
  0x34   : > { %506 = vmatpush1.bf16.msra.mxu1 %v1727_v17  ;;  %434 = vmatprep.subr.bf16.mxu0 %v1728_v18  ;;  %v280_v51 = vld [vmem:[%s2010_s19 + $0x39] sm:$0xff]  ;;  %v1756_v52 = vld [vmem:[#allocation3 + $0x20] ss:$16 sps:$4 sm:$0xff]   ;;  %v1764_v54 = vld [vmem:[#allocation3 + $0x4] ss:$16 sps:$4 sm:$0xff]   ;;  %s1653_s8 = sshll.u32 %s1948_s4, 4 }
  0x35   : > { %507 = vmatprep.subr.bf16.mxu1 %v1730_v19  ;;  %v1759_v53 = vld [vmem:[#allocation3 + $0x28] ss:$16 sps:$4 sm:$0xff]   ;;  %v1767_v55 = vld [vmem:[#allocation3 + $0xc] ss:$16 sps:$4 sm:$0xff]   ;;  %v857_v56 = vld [vmem:[#allocation3 + $0x1a0] sm:$0xff]  ;;  %v285_v57 = vpack.c.bf16 %v280_v51, %v279_v50  ;;  %s236_s9 = scalar_lea.vmem [#allocation6], %s235_s7  ;;  %s1484_s13 = scalar_lea.hbm %s2411_s5, %s1653_s8 }
  0x36   : > { %v858_v58 = vld [vmem:[#allocation3 + $0x1a8] sm:$0xff]  ;;  %v1762_v59 = vld [vmem:[#allocation3] ss:$16 sps:$4 sm:$0xff]   ;;  %v1638_v61 = vcombine.high %v857_v56, %v857_v56  ;;  %v1637_v5 = vcombine.low %v857_v56, %v857_v56  ;;  %v1774_v10 = vld [vmem:[#allocation3 + $0x184] ss:$16 sps:$4 sm:$0xff]   ;;  %s1486_s10 = sshll.u32 %s236_s9, 4  ;;  %s1487_s10 = int_to_ptr.vmem [resolvable:$true] %s1486_s10 }
  0x37   : > { %435 = vmatpush1.bf16.msra.mxu0 %v1732_v20  ;;  %v1765_v60 = vld [vmem:[#allocation3 + $0x8] ss:$16 sps:$4 sm:$0xff]   ;;  %v1640_v62 = vcombine.high %v858_v58, %v858_v58  ;;  %v282_v0 = vld [vmem:[%s2010_s19 + $0x51] sm:$0xff]  ;;  %v245_v3 = vld [vmem:[%s2010_s19] sm:$0xff]  ;;  %v1639_v6 = vcombine.low %v858_v58, %v858_v58  ;;  %s1474_s14 = scalar_lea.sflag [#allocation5], %s235_s7  ;;  %s1822_s15 = scalar_lea.vmem %s1487_s10, 16 }
  0x38   : > { %508 = vmatpush1.bf16.msra.mxu1 %v1733_v21  ;;  %436 = vmatprep.subr.bf16.mxu0 %v1734_v22  ;;  %v281_v63 = vld [vmem:[%s2010_s19 + $0x49] sm:$0xff]  ;;  %v962_v8 = vsel %vm409_vm0, %v1637_v5, 0  ;;  %v1772_v12 = vld [vmem:[#allocation3 + $0x180] ss:$16 sps:$4 sm:$0xff]   ;;  %v247_v13 = vld [vmem:[%s2010_s19 + $0x18] sm:$0xff]  ;;  %p1823_p8 = scmp.ne.s32.totalorder %s1487_s10, %s1822_s15  ;;  %s1893_s16 = smov [#allocation6]  }
  0x39   : > { %509 = vmatprep.subr.bf16.mxu1 %v1736_v23  ;;  %v286_v2 = vpack.c.bf16 %v282_v0, %v281_v63  ;;  %v246_v4 = vld [vmem:[%s2010_s19 + $0x8] sm:$0xff]  ;;  %v968_v9 = vsel %vm409_vm0, %v1639_v6, 0  ;;  %v248_v14 = vld [vmem:[%s2010_s19 + $0x20] sm:$0xff]  ;;  %v249_v23 = vld [vmem:[%s2010_s19 + $0x30] sm:$0xff]  ;;  %s1826_s17 = sshll.u32 %s1893_s16, 4  ;;  %s1827_s17 = int_to_ptr.vmem [resolvable:$false] %s1826_s17 }
  0x3a   : > { %v253_v7 = vpack.c.bf16 %v246_v4, %v245_v3  ;;  %v1777_v11 = vld [vmem:[#allocation3 + $0x18c] ss:$16 sps:$4 sm:$0xff]   ;;  %v1775_v15 = vld [vmem:[#allocation3 + $0x188] ss:$16 sps:$4 sm:$0xff]   ;;  %v1780_v16 = vld [vmem:[#allocation3 + $0x164] ss:$16 sps:$4 sm:$0xff]   ;;  %v254_v18 = vpack.c.bf16 %v248_v14, %v247_v13  ;;  %p1824_p9 = pnand %p1823_p8, %p1965_p5  ;;  %p1829_p11 = scmp.lt.s32.totalorder %s1487_s10, %s1827_s17 }
  0x3b   : > { %437 = vmatpush1.bf16.msra.mxu0 %v1738_v25  ;;  %v1783_v17 = vld [vmem:[#allocation3 + $0x16c] ss:$16 sps:$4 sm:$0xff]   ;;  %v1778_v19 = vld [vmem:[#allocation3 + $0x160] ss:$16 sps:$4 sm:$0xff]   ;;  %v1781_v20 = vld [vmem:[#allocation3 + $0x168] ss:$16 sps:$4 sm:$0xff]  }
  0x3c   : > { %510 = vmatpush1.bf16.msra.mxu1 %v1739_v27  ;;  %1611 = vmatprep.subr.msk.bf16.mxu0 %vm409_vm0, %v1608_v30  ;;  %v1786_v21 = vld [vmem:[#allocation3 + $0x144] ss:$16 sps:$4 sm:$0xff]   ;;  %v1789_v22 = vld [vmem:[#allocation3 + $0x14c] ss:$16 sps:$4 sm:$0xff]   ;;  %v1784_v25 = vld [vmem:[#allocation3 + $0x140] ss:$16 sps:$4 sm:$0xff]   ;;  %p1825_p10 = pneg %p1824_p9 }
  0x3d   : > { %1616 = vmatprep.subr.msk.bf16.mxu1 %vm409_vm0, %v1610_v32  ;;  %v250_v24 = vld [vmem:[%s2010_s19 + $0x38] sm:$0xff]  ;;  %v1790_v30 = vld [vmem:[#allocation3 + $0x120] ss:$16 sps:$4 sm:$0xff]   ;;  %v251_v32 = vld [vmem:[%s2010_s19 + $0x48] sm:$0xff]  ;;  %s1828_s4 = scalar_lea.vmem %s1827_s17, 32 }
  0x3e   : > { %1582 = vmatmul.mubr.msk.bf16.vlgmr.msra.gmra.mxu0 %vm396_vm1, %v283_v34  ;;  %v1787_v26 = vld [vmem:[#allocation3 + $0x148] ss:$16 sps:$4 sm:$0xff]   ;;  %v1792_v27 = vld [vmem:[#allocation3 + $0x124] ss:$16 sps:$4 sm:$0xff]   ;;  %v1795_v28 = vld [vmem:[#allocation3 + $0x12c] ss:$16 sps:$4 sm:$0xff]   ;;  %v255_v29 = vpack.c.bf16 %v250_v24, %v249_v23  ;;  %p1830_p12 = scmp.lt.s32.totalorder %s1828_s4, %s1822_s15 }
  0x3f   : > { %1587 = vmatmul.mubr.msk.bf16.vlgmr.msra.gmra.mxu1 %vm396_vm1, %v283_v34  ;;  %689 = vmatpush1.bf16.msra.mxu0 %v671_v35  ;;  %v1793_v31 = vld [vmem:[#allocation3 + $0x128] ss:$16 sps:$4 sm:$0xff]   ;;  %v252_v33 = vld [vmem:[%s2010_s19 + $0x50] sm:$0xff] }
  0x40   : > { %762 = vmatpush1.bf16.msra.mxu1 %v677_v36  ;;  %464 = vmatprep.mubr.bf16.mxu0 %v1891_v1  ;;  %v256_v34 = vpack.c.bf16 %v252_v33, %v251_v32  ;;  %v828_v35 = vld [vmem:[%s2010_s19 + $0x2] sm:$0xff]  ;;  %v829_v36 = vld [vmem:[%s2010_s19 + $0xa] sm:$0xff]  ;;  %v832_v41 = vld [vmem:[%s2010_s19 + $0x32] sm:$0xff]  ;;  %p1831_p13 = por %p1830_p12, %p1829_p11 }
  0x41   : > { %537 = vmatprep.mubr.bf16.mxu1 %v1891_v1  ;;  %690 = vmatprep.subr.bf16.mxu0 %v1746_v38  ;;  %v830_v38 = vld [vmem:[%s2010_s19 + $0x1a] sm:$0xff] }
  0x42   : > { %763 = vmatprep.subr.bf16.mxu1 %v1749_v39  ;;  %v831_v39 = vld [vmem:[%s2010_s19 + $0x22] sm:$0xff]  ;;  %p1832_p0 = pnand %p1831_p13, %p1825_p10 }
  0x43   : > { %691 = vmatpush1.bf16.msra.mxu0 %v1744_v37  ;;  %v836_v37 = vpack.c.bf16 %v829_v36, %v828_v35  ;;  %v837_v40 = vpack.c.bf16 %v831_v39, %v830_v38 }
  0x44   : > { %764 = vmatpush1.bf16.msra.mxu1 %v1747_v42  ;;  %692 = vmatprep.subr.bf16.mxu0 %v1752_v43  ;;  %v833_v42 = vld [vmem:[%s2010_s19 + $0x3a] sm:$0xff] }
  0x45   : > { %765 = vmatprep.subr.bf16.mxu1 %v1755_v44  ;;  %v838_v43 = vpack.c.bf16 %v833_v42, %v832_v41  ;;  %v834_v44 = vld [vmem:[%s2010_s19 + $0x4a] sm:$0xff] }
  0x46   : > { %1583 = vmatmul.mubr.msk.bf16.gmra.mxu0 %vm396_vm1, %v284_v45 }
  0x47   : > { %1588 = vmatmul.mubr.msk.bf16.gmra.mxu1 %vm396_vm1, %v284_v45  ;;  %693 = vmatpush1.bf16.msra.mxu0 %v1750_v46  ;;  %v835_v45 = vld [vmem:[%s2010_s19 + $0x52] sm:$0xff] }
  0x48   : > { %474 = vmatprep.mubr.bf16.mxu0 %v1891_v1  ;;  %547 = vmatprep.mubr.bf16.mxu1 %v1891_v1  ;;  %v839_v46 = vpack.c.bf16 %v835_v45, %v834_v44 }
  0x49   : > { %766 = vmatpush1.bf16.msra.mxu1 %v1753_v47  ;;  %694 = vmatprep.subr.bf16.mxu0 %v1758_v48 }
  0x4a   : > { %767 = vmatprep.subr.bf16.mxu1 %v1761_v49 }
  0x4b   : > { %695 = vmatpush1.bf16.msra.mxu0 %v1756_v52 }
  0x4c   : > { %696 = vmatprep.subr.bf16.mxu0 %v1764_v54 }
  0x4d   : > { %768 = vmatpush1.bf16.msra.mxu1 %v1759_v53 }
  0x4e   : > { %769 = vmatprep.subr.bf16.mxu1 %v1767_v55  ;;  %1584 = vmatmul.mubr.msk.bf16.gmra.mxu0 %vm396_vm1, %v285_v57 }
  0x4f   : > { %1589 = vmatmul.mubr.msk.bf16.gmra.mxu1 %vm396_vm1, %v285_v57  ;;  %484 = vmatprep.mubr.bf16.mxu0 %v1891_v1 }
  0x50   : > { %557 = vmatprep.mubr.bf16.mxu1 %v1891_v1  ;;  %697 = vmatpush1.bf16.msra.mxu0 %v1762_v59 }
  0x51   : > { %770 = vmatpush1.bf16.msra.mxu1 %v1765_v60  ;;  %1641 = vmatprep.subr.msk.bf16.mxu0 %vm409_vm0, %v1638_v61 }
  0x52   : > { %1646 = vmatprep.subr.msk.bf16.mxu1 %vm409_vm0, %v1640_v62 }
  0x56   : > { %1585 = vmatmul.mubr.msk.bf16.gmra.mxu0 %vm396_vm1, %v286_v2 }
  0x57   : > { %1590 = vmatmul.mubr.msk.bf16.gmra.mxu1 %vm396_vm1, %v286_v2  ;;  %714 = vmatprep.mubr.bf16.mxu0 %v1891_v1 }
  0x58   : > { %787 = vmatprep.mubr.bf16.mxu1 %v1891_v1 }
  0x5e   : > { %1612 = vmatmul.mubr.msk.bf16.vlgmr.msra.gmra.mxu0 %vm396_vm1, %v253_v7 }
  0x5f   : > { %1617 = vmatmul.mubr.msk.bf16.vlgmr.msra.gmra.mxu1 %vm396_vm1, %v253_v7  ;;  %980 = vmatpush1.bf16.msra.mxu0 %v962_v8 }
  0x60   : > { %1053 = vmatpush1.bf16.msra.mxu1 %v968_v9  ;;  %724 = vmatprep.mubr.bf16.mxu0 %v1891_v1 }
  0x61   : > { %797 = vmatprep.mubr.bf16.mxu1 %v1891_v1  ;;  %981 = vmatprep.subr.bf16.mxu0 %v1774_v10 }
  0x62   : > { %1054 = vmatprep.subr.bf16.mxu1 %v1777_v11 }
  0x63   : > { %982 = vmatpush1.bf16.msra.mxu0 %v1772_v12 }
  0x64   : > { %1055 = vmatpush1.bf16.msra.mxu1 %v1775_v15  ;;  %983 = vmatprep.subr.bf16.mxu0 %v1780_v16 }
  0x65   : > { %1056 = vmatprep.subr.bf16.mxu1 %v1783_v17 }
  0x66   : > { %1613 = vmatmul.mubr.msk.bf16.gmra.mxu0 %vm396_vm1, %v254_v18 }
  0x67   : > { %1618 = vmatmul.mubr.msk.bf16.gmra.mxu1 %vm396_vm1, %v254_v18  ;;  %984 = vmatpush1.bf16.msra.mxu0 %v1778_v19 }
  0x68   : > { %734 = vmatprep.mubr.bf16.mxu0 %v1891_v1  ;;  %807 = vmatprep.mubr.bf16.mxu1 %v1891_v1 }
  0x69   : > { %1057 = vmatpush1.bf16.msra.mxu1 %v1781_v20  ;;  %985 = vmatprep.subr.bf16.mxu0 %v1786_v21 }
  0x6a   : > { %1058 = vmatprep.subr.bf16.mxu1 %v1789_v22 }
  0x6b   : > { %986 = vmatpush1.bf16.msra.mxu0 %v1784_v25 }
  0x6c   : > { %987 = vmatprep.subr.bf16.mxu0 %v1792_v27 }
  0x6d   : > { %1059 = vmatpush1.bf16.msra.mxu1 %v1787_v26 }
  0x6e   : > { %1060 = vmatprep.subr.bf16.mxu1 %v1795_v28  ;;  %1614 = vmatmul.mubr.msk.bf16.gmra.mxu0 %vm396_vm1, %v255_v29 }
  0x6f   : > { %1619 = vmatmul.mubr.msk.bf16.gmra.mxu1 %vm396_vm1, %v255_v29  ;;  %744 = vmatprep.mubr.bf16.mxu0 %v1891_v1 }
  0x70   : > { %817 = vmatprep.mubr.bf16.mxu1 %v1891_v1  ;;  %988 = vmatpush1.bf16.msra.mxu0 %v1790_v30 }
  0x71   : > { %1061 = vmatpush1.bf16.msra.mxu1 %v1793_v31  ;;  %v2412_v31 = vlaneseq }
  0x73   : > { %v2155_v36 = vshrl.u32 %v2412_v31, 7  ;;  %v1349_v31 = vld [vmem:[%s2409_s3] sm:$0xf] }
  0x75   : > { %2436 = vst [vmem:[#allocation22_spill] sm:$0xff] %v2155_v36  ;;  %v1155_v41 = vsub.s32 0, %v2155_v36  ;;  %v1163_v42 = vsub.s32 2, %v2155_v36  ;;  %v1167_v44 = vsub.s32 3, %v2155_v36 }
  0x76   : > { %1615 = vmatmul.mubr.msk.bf16.gmra.mxu0 %vm396_vm1, %v256_v34 }
  0x77   : > { %1620 = vmatmul.mubr.msk.bf16.gmra.mxu1 %vm396_vm1, %v256_v34  ;;  %1005 = vmatprep.mubr.bf16.mxu0 %v1891_v1 }
  0x78   : > { %1078 = vmatprep.mubr.bf16.mxu1 %v1891_v1 }
  0x7e   : > { %1642 = vmatmul.mubr.msk.bf16.vlgmr.msra.gmra.mxu0 %vm396_vm1, %v836_v37 }
  0x7f   : > { %1647 = vmatmul.mubr.msk.bf16.vlgmr.msra.gmra.mxu1 %vm396_vm1, %v836_v37  ;;  %1015 = vmatprep.mubr.bf16.mxu0 %v1891_v1 }
  0x80   : > { %1088 = vmatprep.mubr.bf16.mxu1 %v1891_v1 }
  0x86   : > { %1643 = vmatmul.mubr.msk.bf16.gmra.mxu0 %vm396_vm1, %v837_v40 }
  0x87   : > { %1648 = vmatmul.mubr.msk.bf16.gmra.mxu1 %vm396_vm1, %v837_v40  ;;  %1025 = vmatprep.mubr.bf16.mxu0 %v1891_v1 }
  0x88   : > { %1098 = vmatprep.mubr.bf16.mxu1 %v1891_v1 }
  0x8e   : > { %1644 = vmatmul.mubr.msk.bf16.gmra.mxu0 %vm396_vm1, %v838_v43 }
  0x8f   : > { %1649 = vmatmul.mubr.msk.bf16.gmra.mxu1 %vm396_vm1, %v838_v43  ;;  %1035 = vmatprep.mubr.bf16.mxu0 %v1891_v1  ;;  %v1159_v43 = vsub.s32 1, %v2155_v36 }
  0x90   : > { %1108 = vmatprep.mubr.bf16.mxu1 %v1891_v1 }
  0x96   : > { %1645 = vmatmul.mubr.msk.bf16.gmra.mxu0 %vm396_vm1, %v839_v46 }
  0x97   : > { %1650 = vmatmul.mubr.msk.bf16.gmra.mxu1 %vm396_vm1, %v839_v46 }
  0xfe   : > { %v2090_v47 = vpop.f32.mrf.mxu0 }
  0xff   : > { %v2092_v48 = vpop.f32.mrf.mxu1 }
 0x100   : > { %v2094_v49 = vpop.f32.mrf.mxu0 }
 0x101   : > { %v2096_v50 = vpop.f32.mrf.mxu1 }
 0x102   : > { %v2098_v51 = vpop.f32.mrf.mxu0 }
 0x103   : > { %v2100_v52 = vpop.f32.mrf.mxu1 }
 0x104   : > { %v2102_v1 = vpop.f32.mrf.mxu0 }
 0x105   : > { %v2104_v53 = vpop.f32.mrf.mxu1 }
 0x106   : > { %v2106_v54 = vpop.f32.mrf.mxu0 }
 0x107   : > { %v2108_v55 = vpop.f32.mrf.mxu1 }
 0x108   : > { %v2110_v56 = vpop.f32.mrf.mxu0 }
 0x109   : > { %v2112_v57 = vpop.f32.mrf.mxu1 }
 0x10a   : > { %v2114_v58 = vpop.f32.mrf.mxu0 }
 0x10b   : > { %v2116_v59 = vpop.f32.mrf.mxu1 }
 0x10c   : > { %v2118_v60 = vpop.f32.mrf.mxu0 }
 0x10d   : > { %v2120_v61 = vpop.f32.mrf.mxu1 }
 0x10e   : > { %v2122_v62 = vpop.f32.mrf.mxu0 }
 0x10f   : > { %v2124_v63 = vpop.f32.mrf.mxu1 }
 0x110   : > { %v2126_v0 = vpop.f32.mrf.mxu0 }
 0x111   : > { %v2128_v2 = vpop.f32.mrf.mxu1 }
 0x112   : > { %2423 = vst [vmem:[#allocation9_spill] sm:$0xff] %v2128_v2  ;;  %v2130_v3 = vpop.f32.mrf.mxu0 }
 0x113   : > { %2424 = vst [vmem:[#allocation10_spill] sm:$0xff] %v2130_v3  ;;  %v2132_v4 = vpop.f32.mrf.mxu1  ;;  %v2181_v3 = vrot.slane %v1349_v31, %v1167_v44 }
 0x114   : > { %2425 = vst [vmem:[#allocation11_spill] sm:$0xff] %v2132_v4  ;;  %v2134_v5 = vpop.f32.mrf.mxu0  ;;  %v2179_v4 = vrot.slane %v1349_v31, %v1163_v42 }
 0x115   : > { %2426 = vst [vmem:[#allocation12_spill] sm:$0xff] %v2134_v5  ;;  %v2136_v6 = vpop.f32.mrf.mxu1  ;;  %v2177_v5 = vrot.slane %v1349_v31, %v1159_v43 }
 0x116   : > { %2427 = vst [vmem:[#allocation13_spill] sm:$0xff] %v2136_v6  ;;  %v2138_v7 = vpop.f32.mrf.mxu0  ;;  %v2175_v6 = vrot.slane %v1349_v31, %v1155_v41  ;;  %2441 = vst [vmem:[#allocation27_spill] sm:$0xff] %v2179_v4 }
 0x117   : > { %2428 = vst [vmem:[#allocation14_spill] sm:$0xff] %v2138_v7  ;;  %v2140_v8 = vpop.f32.mrf.mxu1 }
 0x118   : > { %2429 = vst [vmem:[#allocation15_spill] sm:$0xff] %v2140_v8  ;;  %v2142_v9 = vpop.f32.mrf.mxu0 }
 0x119   : > { %2430 = vst [vmem:[#allocation16_spill] sm:$0xff] %v2142_v9  ;;  %v2144_v10 = vpop.f32.mrf.mxu1 }
 0x11a   : > { %2431 = vst [vmem:[#allocation17_spill] sm:$0xff] %v2144_v10  ;;  %v2146_v11 = vpop.f32.mrf.mxu0 }
 0x11b   : > { %2432 = vst [vmem:[#allocation18_spill] sm:$0xff] %v2146_v11  ;;  %v2148_v12 = vpop.f32.mrf.mxu1 }
 0x11c   : > { %2433 = vst [vmem:[#allocation19_spill] sm:$0xff] %v2148_v12  ;;  %v2150_v13 = vpop.f32.mrf.mxu0 }
 0x11d   : > { %2434 = vst [vmem:[#allocation20_spill] sm:$0xff] %v2150_v13  ;;  %v2152_v14 = vpop.f32.mrf.mxu1 }
 0x11e   : > { %2435 = vst [vmem:[#allocation21_spill] sm:$0xff] %v2152_v14  ;;  %v716_v15 = vpop.f32.mrf.mxu0  ;;  %v1151_v14 = vld [vmem:[%s2408_s2] sm:$0xf] }
 0x11f   : > { %v789_v16 = vpop.f32.mrf.mxu1  ;;  %v2167_v11 = vrot.slane %v1151_v14, %v1155_v41  ;;  %v2169_v10 = vrot.slane %v1151_v14, %v1163_v42  ;;  %v2171_v9 = vrot.slane %v1151_v14, %v1159_v43  ;;  %v2173_v8 = vrot.slane %v1151_v14, %v1167_v44 }
 0x120   : > { %v718_v17 = vpop.f32.mrf.mxu0  ;;  %v717_v2 = vadd.f32 %v716_v15, %v2090_v47 }
 0x121   : > { %v791_v18 = vpop.f32.mrf.mxu1  ;;  %2437 = vst [vmem:[#allocation23_spill] sm:$0xff] %v2167_v11  ;;  %2438 = vst [vmem:[#allocation24_spill] sm:$0xff] %v2169_v10  ;;  %v790_v11 = vadd.f32 %v789_v16, %v2092_v48  ;;  %v719_v10 = vadd.f32 %v718_v17, %v2094_v49 }
 0x122   : > { %v720_v19 = vpop.f32.mrf.mxu0  ;;  %2439 = vst [vmem:[#allocation25_spill] sm:$0xff] %v2171_v9  ;;  %2440 = vst [vmem:[#allocation26_spill] sm:$0xff] %v2173_v8  ;;  %v792_v9 = vadd.f32 %v791_v18, %v2096_v50 }
 0x123   : > { %v793_v20 = vpop.f32.mrf.mxu1  ;;  %v721_v14 = vadd.f32 %v720_v19, %v2098_v51 }
 0x124   : > { %v722_v21 = vpop.f32.mrf.mxu0  ;;  %v794_v8 = vadd.f32 %v793_v20, %v2100_v52  ;;  %v2445_v20 = vld [vmem:[#allocation12_spill] sm:$0xff] }
 0x125   : > { %v795_v22 = vpop.f32.mrf.mxu1  ;;  %v723_v41 = vadd.f32 %v722_v21, %v2102_v1 }
 0x126   : > { %v726_v23 = vpop.f32.mrf.mxu0  ;;  %v796_v43 = vadd.f32 %v795_v22, %v2104_v53  ;;  %v2447_v22 = vld [vmem:[#allocation14_spill] sm:$0xff] }
 0x127   : > { %v799_v24 = vpop.f32.mrf.mxu1  ;;  %v727_v31 = vadd.f32 %v726_v23, %v2106_v54 }
 0x128   : > { %v728_v25 = vpop.f32.mrf.mxu0  ;;  %v800_v47 = vadd.f32 %v799_v24, %v2108_v55  ;;  %v2448_v24 = vld [vmem:[#allocation15_spill] sm:$0xff] }
 0x129   : > { %v801_v26 = vpop.f32.mrf.mxu1  ;;  %v2194_v48 = vadd.f32 %v728_v25, %v2110_v56 }
 0x12a   : > { %v730_v27 = vpop.f32.mrf.mxu0  ;;  %v2197_v49 = vadd.f32 %v801_v26, %v2112_v57  ;;  %v2449_v26 = vld [vmem:[#allocation23_spill] sm:$0xff] }
 0x12b   : > { %v803_v28 = vpop.f32.mrf.mxu1  ;;  %v2200_v50 = vadd.f32 %v730_v27, %v2114_v58 }
 0x12c   : > { %v732_v29 = vpop.f32.mrf.mxu0  ;;  %v2203_v51 = vadd.f32 %v803_v28, %v2116_v59  ;;  %v2442_v59 = vld [vmem:[#allocation9_spill] sm:$0xff]  ;;  %v2450_v28 = vld [vmem:[#allocation24_spill] sm:$0xff] }
 0x12d   : > { %v805_v30 = vpop.f32.mrf.mxu1  ;;  %v2206_v52 = vadd.f32 %v732_v29, %v2118_v60  ;;  %v2443_v60 = vld [vmem:[#allocation10_spill] sm:$0xff] }
 0x12e   : > { %v736_v32 = vpop.f32.mrf.mxu0  ;;  %v2209_v1 = vadd.f32 %v805_v30, %v2120_v61  ;;  %v2444_v61 = vld [vmem:[#allocation11_spill] sm:$0xff] }
 0x12f   : > { %v809_v33 = vpop.f32.mrf.mxu1  ;;  %v2212_v55 = vadd.f32 %v736_v32, %v2122_v62 }
 0x130   : > { %v738_v34 = vpop.f32.mrf.mxu0  ;;  %v2215_v56 = vadd.f32 %v809_v33, %v2124_v63  ;;  %v2446_v63 = vld [vmem:[#allocation13_spill] sm:$0xff]  ;;  %v2451_v33 = vld [vmem:[#allocation16_spill] sm:$0xff] }
 0x131   : > { %v811_v35 = vpop.f32.mrf.mxu1  ;;  %v2218_v15 = vadd.f32 %v738_v34, %v2126_v0 }
 0x132   : > { %v740_v37 = vpop.f32.mrf.mxu0  ;;  %v2221_v16 = vadd.f32 %v811_v35, %v2442_v59  ;;  %v2452_v35 = vld [vmem:[#allocation17_spill] sm:$0xff]  ;;  %v2457_v59 = vld [vmem:[#allocation20_spill] sm:$0xff] }
 0x133   : > { %v813_v38 = vpop.f32.mrf.mxu1  ;;  %v2224_v17 = vadd.f32 %v740_v37, %v2443_v60  ;;  %v2458_v60 = vld [vmem:[#allocation21_spill] sm:$0xff] }
 0x134   : > { %v742_v39 = vpop.f32.mrf.mxu0  ;;  %v2227_v18 = vadd.f32 %v813_v38, %v2444_v61  ;;  %v2454_v38 = vld [vmem:[#allocation19_spill] sm:$0xff] }
 0x135   : > { %v815_v40 = vpop.f32.mrf.mxu1  ;;  %v2230_v21 = vadd.f32 %v742_v39, %v2445_v20 }
 0x136   : > { %v746_v45 = vpop.f32.mrf.mxu0 }
 0x137   : > { %v819_v46 = vpop.f32.mrf.mxu1  ;;  %v2236_v23 = vadd.f32 %v746_v45, %v2447_v22  ;;  %v2456_v45 = vld [vmem:[#allocation26_spill] sm:$0xff] }
 0x138   : > { %v748_v13 = vpop.f32.mrf.mxu0  ;;  %v2239_v25 = vadd.f32 %v819_v46, %v2448_v24 }
 0x139   : > { %v821_v12 = vpop.f32.mrf.mxu1  ;;  %v2244_v34 = vadd.f32 %v748_v13, %v2451_v33 }
 0x13a   : > { %v750_v36 = vpop.f32.mrf.mxu0  ;;  %v2247_v37 = vadd.f32 %v821_v12, %v2452_v35 }
 0x13b   : > { %v823_v7 = vpop.f32.mrf.mxu1 }
 0x13c   : > { %v752_v42 = vpop.f32.mrf.mxu0  ;;  %v2253_v39 = vadd.f32 %v823_v7, %v2454_v38 }
 0x13d   : > { %v825_v4 = vpop.f32.mrf.mxu1  ;;  %v2258_v13 = vadd.f32 %v752_v42, %v2457_v59 }
 0x13e   : > { %v1007_v53 = vpop.f32.mrf.mxu0  ;;  %v2261_v12 = vadd.f32 %v825_v4, %v2458_v60 }
 0x13f   : > { %v1080_v54 = vpop.f32.mrf.mxu1  ;;  %v1119_v57 = vadd.f32 %v1007_v53, %v717_v2  ;;  %v2233_v2 = vadd.f32 %v815_v40, %v2446_v63  ;;  %v2455_v40 = vld [vmem:[#allocation25_spill] sm:$0xff] }
 0x140   : > { %v1121_v58 = vadd.f32 %v1080_v54, %v790_v11  ;;  %v1009_v19 = vpop.f32.mrf.mxu0 }
 0x141   : > { %v1082_v62 = vpop.f32.mrf.mxu1  ;;  %v1120_v11 = vadd.f32 %v1009_v19, %v719_v10  ;;  %v1173_v27 = vadd.f32 %v2449_v26, %v1119_v57  ;;  %v2453_v10 = vld [vmem:[#allocation18_spill] sm:$0xff] }
 0x142   : > { %v1122_v0 = vadd.f32 %v1082_v62, %v792_v9  ;;  %v1175_v29 = vadd.f32 %v2450_v28, %v1121_v58  ;;  %v1011_v30 = vpop.f32.mrf.mxu0  ;;  %v2250_v9 = vadd.f32 %v750_v36, %v2453_v10 }
 0x143   : > { %v1084_v32 = vpop.f32.mrf.mxu1  ;;  %v1174_v44 = vadd.f32 %v2455_v40, %v1120_v11  ;;  %v1123_v53 = vadd.f32 %v1011_v30, %v721_v14  ;;  %v1205_v19 = vmax.f32 %v1173_v27, 0.0 }
 0x144   : > { %v1176_v46 = vadd.f32 %v2456_v45, %v1122_v0  ;;  %v1125_v54 = vadd.f32 %v1084_v32, %v794_v8  ;;  %v1013_v57 = vpop.f32.mrf.mxu0  ;;  %v1207_v62 = vmax.f32 %v1175_v29, 0.0 }
 0x145   : > { %v1086_v58 = vpop.f32.mrf.mxu1  ;;  %v1124_v61 = vadd.f32 %v1013_v57, %v723_v41  ;;  %v1177_v7 = vadd.f32 %v2449_v26, %v1123_v53  ;;  %v1206_v22 = vmax.f32 %v1174_v44, 0.0 }
 0x146   : > { %v1126_v36 = vadd.f32 %v1086_v58, %v796_v43  ;;  %v1179_v20 = vadd.f32 %v2450_v28, %v1125_v54  ;;  %v1017_v63 = vpop.f32.mrf.mxu0  ;;  %v1208_v24 = vmax.f32 %v1176_v46, 0.0 }
 0x147   : > { %v1090_v11 = vpop.f32.mrf.mxu1  ;;  %v1178_v8 = vadd.f32 %v2455_v40, %v1124_v61  ;;  %v1127_v0 = vadd.f32 %v1017_v63, %v727_v31  ;;  %v1209_v4 = vmax.f32 %v1177_v7, 0.0 }
 0x148   : > { %v1180_v14 = vadd.f32 %v2456_v45, %v1126_v36  ;;  %v1129_v42 = vadd.f32 %v1090_v11, %v800_v47  ;;  %v1211_v30 = vmax.f32 %v1179_v20, 0.0  ;;  %v1019_v41 = vpop.f32.mrf.mxu0 }
 0x149   : > { %v1092_v43 = vpop.f32.mrf.mxu1  ;;  %v1210_v27 = vmax.f32 %v1178_v8, 0.0  ;;  %v1181_v32 = vadd.f32 %v2449_v26, %v1127_v0  ;;  %v1237_v35 = vadd.f32 %v1209_v4, %v1205_v19  ;;  %v1128_v38 = vadd.f32 %v1019_v41, %v2194_v48 }
 0x14a   : > { %v1212_v29 = vmax.f32 %v1180_v14, 0.0  ;;  %v1183_v33 = vadd.f32 %v2450_v28, %v1129_v42  ;;  %v1251_v10 = vadd.f32 %v1211_v30, %v1207_v62  ;;  %v1130_v53 = vadd.f32 %v1092_v43, %v2197_v49  ;;  %v1021_v31 = vpop.f32.mrf.mxu0 }
 0x14b   : > { %v1094_v47 = vpop.f32.mrf.mxu1  ;;  %v1244_v44 = vadd.f32 %v1210_v27, %v1206_v22  ;;  %v1213_v54 = vmax.f32 %v1181_v32, 0.0  ;;  %v1238_v58 = vrot.slane %v1237_v35, 4  ;;  %v1182_v60 = vadd.f32 %v2455_v40, %v1128_v38 }
 0x14c   : > { %v1258_v46 = vadd.f32 %v1212_v29, %v1208_v24  ;;  %v1215_v57 = vmax.f32 %v1183_v33, 0.0  ;;  %v1252_v59 = vrot.slane %v1251_v10, 4  ;;  %v1184_v61 = vadd.f32 %v2456_v45, %v1130_v53  ;;  %v1023_v36 = vpop.f32.mrf.mxu0 }
 0x14d   : > { %v1096_v7 = vpop.f32.mrf.mxu1  ;;  %v1245_v19 = vrot.slane %v1244_v44, 4  ;;  %v1131_v48 = vadd.f32 %v1021_v31, %v2200_v50  ;;  %v1133_v49 = vadd.f32 %v1094_v47, %v2203_v51  ;;  %v1239_v20 = vadd.f32 %v1238_v58, %v1237_v35 }
 0x14e   : > { %v1259_v62 = vrot.slane %v1258_v46, 4  ;;  %v1253_v63 = vadd.f32 %v1252_v59, %v1251_v10  ;;  %v1214_v11 = vmax.f32 %v1182_v60, 0.0  ;;  %v1216_v8 = vmax.f32 %v1184_v61, 0.0  ;;  %v1027_v14 = vpop.f32.mrf.mxu0 }
 0x14f   : > { %v1246_v0 = vadd.f32 %v1245_v19, %v1244_v44  ;;  %v1185_v22 = vadd.f32 %v2449_v26, %v1131_v48  ;;  %v1187_v24 = vadd.f32 %v2450_v28, %v1133_v49  ;;  %v1100_v4 = vpop.f32.mrf.mxu1  ;;  %v1240_v30 = vrot.slane %v1239_v20, 2 }
 0x150   : > { %v1260_v42 = vadd.f32 %v1259_v62, %v1258_v46  ;;  %v1254_v41 = vrot.slane %v1253_v63, 2  ;;  %v1132_v43 = vadd.f32 %v1023_v36, %v2206_v52  ;;  %v1134_v50 = vadd.f32 %v1096_v7, %v2209_v1  ;;  %v1029_v27 = vpop.f32.mrf.mxu0 }
 0x151   : > { %v1247_v51 = vrot.slane %v1246_v0, 2  ;;  %v1217_v32 = vmax.f32 %v1185_v22, 0.0  ;;  %v1219_v33 = vmax.f32 %v1187_v24, 0.0  ;;  %v1241_v35 = vadd.f32 %v1240_v30, %v1239_v20  ;;  %v1102_v58 = vpop.f32.mrf.mxu1 }
 0x152   : > { %v1261_v29 = vrot.slane %v1260_v42, 2  ;;  %v1255_v10 = vadd.f32 %v1254_v41, %v1253_v63  ;;  %v1186_v38 = vadd.f32 %v2455_v40, %v1132_v43  ;;  %v1188_v53 = vadd.f32 %v2456_v45, %v1134_v50  ;;  %v1031_v61 = vpop.f32.mrf.mxu0 }
 0x153   : > { %v1248_v31 = vadd.f32 %v1247_v51, %v1246_v0  ;;  %v1265_v44 = vadd.f32 %v1217_v32, %v1213_v54  ;;  %v1279_v46 = vadd.f32 %v1219_v33, %v1215_v57  ;;  %v1242_v59 = vrot.slane %v1241_v35, 1 }
 0x154   : > { %v1262_v47 = vadd.f32 %v1261_v29, %v1260_v42  ;;  %v1256_v52 = vrot.slane %v1255_v10, 1  ;;  %v1218_v60 = vmax.f32 %v1186_v38, 0.0  ;;  %v1220_v1 = vmax.f32 %v1188_v53, 0.0  ;;  %v1104_v42 = vpop.f32.mrf.mxu1  ;;  %v1033_v50 = vpop.f32.mrf.mxu0 }
 0x155   : > { %v1249_v36 = vrot.slane %v1248_v31, 1  ;;  %v1266_v19 = vrot.slane %v1265_v44, 4  ;;  %v1280_v62 = vrot.slane %v1279_v46, 4  ;;  %v1243_v48 = vadd.f32 %v1242_v59, %v1241_v35 }
 0x156   : > { %v1263_v7 = vrot.slane %v1262_v47, 1  ;;  %v2281_v49 = vadd.f32 %v1256_v52, %v1255_v10  ;;  %v1272_v20 = vadd.f32 %v1218_v60, %v1214_v11  ;;  %v1286_v63 = vadd.f32 %v1220_v1, %v1216_v8  ;;  %v1037_v52 = vpop.f32.mrf.mxu0 }
 0x157   : > { %v1250_v22 = vadd.f32 %v1249_v36, %v1248_v31  ;;  %v1267_v54 = vadd.f32 %v1266_v19, %v1265_v44  ;;  %v1281_v57 = vadd.f32 %v1280_v62, %v1279_v46  ;;  %v2286_v24 = vmul.f32 %v2175_v6, %v1243_v48 }
 0x158   : > { %v2283_v0 = vadd.f32 %v1263_v7, %v1262_v47  ;;  %v1273_v30 = vrot.slane %v1272_v20, 4  ;;  %v1287_v41 = vrot.slane %v1286_v63, 4  ;;  %v1135_v43 = vadd.f32 %v1027_v14, %v2212_v55  ;;  %v1106_v14 = vpop.f32.mrf.mxu1 }
 0x159   : > { %v2290_v51 = vmul.f32 %v2177_v5, %v1250_v22  ;;  %v1268_v29 = vrot.slane %v1267_v54, 2  ;;  %v1282_v11 = vrot.slane %v1281_v57, 2  ;;  %v1137_v8 = vadd.f32 %v1100_v4, %v2215_v56 }
 0x15a   : > { %v1274_v32 = vadd.f32 %v1273_v30, %v1272_v20  ;;  %v1288_v33 = vadd.f32 %v1287_v41, %v1286_v63  ;;  %v1189_v35 = vadd.f32 %v2449_v26, %v1135_v43  ;;  %v1136_v10 = vadd.f32 %v1029_v27, %v2218_v15  ;;  %v1110_v48 = vpop.f32.mrf.mxu1  ;;  %v2459_v41 = vld [vmem:[#allocation27_spill] sm:$0xff] }
 0x15b   : > { %v1269_v38 = vadd.f32 %v1268_v29, %v1267_v54  ;;  %v1283_v53 = vadd.f32 %v1282_v11, %v1281_v57  ;;  %v1191_v31 = vadd.f32 %v2450_v28, %v1137_v8  ;;  %v1138_v55 = vadd.f32 %v1102_v58, %v2221_v16  ;;  %v1039_v57 = vpop.f32.mrf.mxu0 }
 0x15c   : > { %v1275_v47 = vrot.slane %v1274_v32, 2  ;;  %v1289_v44 = vrot.slane %v1288_v33, 2  ;;  %v1221_v46 = vmax.f32 %v1189_v35, 0.0  ;;  %v1190_v59 = vadd.f32 %v2455_v40, %v1136_v10 }
 0x15d   : > { %v1270_v56 = vrot.slane %v1269_v38, 1  ;;  %v1284_v4 = vrot.slane %v1283_v53, 1  ;;  %v1223_v60 = vmax.f32 %v1191_v31, 0.0  ;;  %v1192_v1 = vadd.f32 %v2456_v45, %v1138_v55 }
 0x15e   : > { %v1276_v36 = vadd.f32 %v1275_v47, %v1274_v32  ;;  %v1290_v15 = vadd.f32 %v1289_v44, %v1288_v33  ;;  %v1222_v27 = vmax.f32 %v1190_v59, 0.0  ;;  %v1139_v7 = vadd.f32 %v1031_v61, %v2224_v17  ;;  %v1112_v33 = vpop.f32.mrf.mxu1 }
 0x15f   : > { %v1271_v19 = vadd.f32 %v1270_v56, %v1269_v38  ;;  %v1285_v62 = vadd.f32 %v1284_v4, %v1283_v53  ;;  %v1224_v16 = vmax.f32 %v1192_v1, 0.0  ;;  %v1141_v58 = vadd.f32 %v1104_v42, %v2227_v18  ;;  %v1041_v53 = vpop.f32.mrf.mxu0 }
 0x160   : > { %v1277_v20 = vrot.slane %v1276_v36, 1  ;;  %v1291_v63 = vrot.slane %v1290_v15, 1  ;;  %v1193_v22 = vadd.f32 %v2449_v26, %v1139_v7  ;;  %v1140_v54 = vadd.f32 %v1033_v50, %v2230_v21 }
 0x161   : > { %v2304_v30 = vmul.f32 %v2175_v6, %v1271_v19  ;;  %v2307_v43 = vmul.f32 %v2459_v41, %v1285_v62  ;;  %v1195_v17 = vadd.f32 %v2450_v28, %v1141_v58  ;;  %v1142_v61 = vadd.f32 %v1106_v14, %v2233_v2  ;;  %v1043_v19 = vpop.f32.mrf.mxu0 }
 0x162   : > { %v1278_v29 = vadd.f32 %v1277_v20, %v1276_v36  ;;  %v2311_v18 = vadd.f32 %v1291_v63, %v1290_v15  ;;  %v1225_v42 = vmax.f32 %v1193_v22, 0.0  ;;  %v1194_v11 = vadd.f32 %v2455_v40, %v1140_v54  ;;  %v1114_v36 = vpop.f32.mrf.mxu1 }
 0x163   : > { %v1403_v8 = vrot.slane %v2304_v30, 7  ;;  %v1227_v21 = vmax.f32 %v1195_v17, 0.0  ;;  %v1196_v50 = vadd.f32 %v2456_v45, %v1142_v61  ;;  %v1143_v32 = vadd.f32 %v1037_v52, %v2236_v23 }
 0x164   : > { %v2318_v35 = vmul.f32 %v2177_v5, %v1278_v29  ;;  %v1293_v10 = vadd.f32 %v1225_v42, %v1221_v46  ;;  %v1226_v38 = vmax.f32 %v1194_v11, 0.0  ;;  %v1145_v2 = vadd.f32 %v1110_v48, %v2239_v25  ;;  %v1116_v61 = vpop.f32.mrf.mxu1 }
 0x165   : > { %v1307_v31 = vadd.f32 %v1227_v21, %v1223_v60  ;;  %v1228_v55 = vmax.f32 %v1196_v50, 0.0  ;;  %v1197_v14 = vadd.f32 %v2449_v26, %v1143_v32  ;;  %v1144_v47 = vadd.f32 %v1039_v57, %v2244_v34 }
 0x166   : > { %v1412_v44 = vrot.slane %v2318_v35, 7  ;;  %v1294_v59 = vrot.slane %v1293_v10, 4  ;;  %v1300_v56 = vadd.f32 %v1226_v38, %v1222_v27  ;;  %v1199_v23 = vadd.f32 %v2450_v28, %v1145_v2 }
 0x167   : > { %v1308_v52 = vrot.slane %v1307_v31, 4  ;;  %v1314_v4 = vadd.f32 %v1228_v55, %v1224_v16  ;;  %v1229_v1 = vmax.f32 %v1197_v14, 0.0  ;;  %v1198_v46 = vadd.f32 %v2455_v40, %v1144_v47 }
 0x168   : > { %v1295_v25 = vadd.f32 %v1294_v59, %v1293_v10  ;;  %v1301_v15 = vrot.slane %v1300_v56, 4  ;;  %v1231_v60 = vmax.f32 %v1199_v23, 0.0  ;;  %v1146_v7 = vadd.f32 %v1112_v33, %v2247_v37 }
 0x169   : > { %v1309_v62 = vadd.f32 %v1308_v52, %v1307_v31  ;;  %v1315_v34 = vrot.slane %v1314_v4, 4  ;;  %v1230_v58 = vmax.f32 %v1198_v46, 0.0  ;;  %v1147_v48 = vadd.f32 %v1041_v53, %v2250_v9 }
 0x16a   : > { %v1296_v27 = vrot.slane %v1295_v25, 2  ;;  %v1302_v20 = vadd.f32 %v1301_v15, %v1300_v56  ;;  %v1200_v63 = vadd.f32 %v2456_v45, %v1146_v7  ;;  %v1149_v16 = vadd.f32 %v1114_v36, %v2253_v39 }
 0x16b   : > { %v1310_v22 = vrot.slane %v1309_v62, 2  ;;  %v1316_v54 = vadd.f32 %v1315_v34, %v1314_v4  ;;  %v1201_v57 = vadd.f32 %v2449_v26, %v1147_v48  ;;  %v1148_v17 = vadd.f32 %v1043_v19, %v2258_v13 }
 0x16c   : > { %v1297_v37 = vadd.f32 %v1296_v27, %v1295_v25  ;;  %v1303_v29 = vrot.slane %v1302_v20, 2  ;;  %v1232_v42 = vmax.f32 %v1200_v63, 0.0  ;;  %v1203_v11 = vadd.f32 %v2450_v28, %v1149_v16 }
 0x16d   : > { %v1311_v9 = vadd.f32 %v1310_v22, %v1309_v62  ;;  %v1317_v21 = vrot.slane %v1316_v54, 2  ;;  %v1233_v50 = vmax.f32 %v1201_v57, 0.0  ;;  %v1202_v32 = vadd.f32 %v2455_v40, %v1148_v17 }
 0x16e   : > { %v1298_v33 = vrot.slane %v1297_v37, 1  ;;  %v1304_v39 = vadd.f32 %v1303_v29, %v1302_v20  ;;  %v1235_v10 = vmax.f32 %v1203_v11, 0.0  ;;  %v1150_v38 = vadd.f32 %v1116_v61, %v2261_v12 }
 0x16f   : > { %v1312_v26 = vrot.slane %v1311_v9, 1  ;;  %v1318_v13 = vadd.f32 %v1317_v21, %v1316_v54  ;;  %v1321_v2 = vadd.f32 %v1233_v50, %v1229_v1  ;;  %v1234_v53 = vmax.f32 %v1202_v32, 0.0 }
 0x170   : > { %v1299_v31 = vadd.f32 %v1298_v33, %v1297_v37  ;;  %v1305_v55 = vrot.slane %v1304_v39, 1  ;;  %v1335_v14 = vadd.f32 %v1235_v10, %v1231_v60  ;;  %v1204_v28 = vadd.f32 %v2456_v45, %v1150_v38 }
 0x171   : > { %v1313_v47 = vadd.f32 %v1312_v26, %v1311_v9  ;;  %v1319_v59 = vrot.slane %v1318_v13, 1  ;;  %v1322_v56 = vrot.slane %v1321_v2, 4  ;;  %v1328_v23 = vadd.f32 %v1234_v53, %v1230_v58 }
 0x172   : > { %v1379_v40 = vmul.f32 %v2175_v6, %v1299_v31  ;;  %v1306_v52 = vadd.f32 %v1305_v55, %v1304_v39  ;;  %v1336_v4 = vrot.slane %v1335_v14, 4  ;;  %v1236_v46 = vmax.f32 %v1204_v28, 0.0 }
 0x173   : > { %v1320_v12 = vadd.f32 %v1319_v59, %v1318_v13  ;;  %v1323_v36 = vadd.f32 %v1322_v56, %v1321_v2  ;;  %v1329_v25 = vrot.slane %v1328_v23, 4  ;;  %v1373_v1 = vmul.f32 %v2459_v41, %v2281_v49 }
 0x174   : > { %v1380_v15 = vmul.f32 %v2177_v5, %v1306_v52  ;;  %v1337_v60 = vadd.f32 %v1336_v4, %v1335_v14  ;;  %v1342_v7 = vadd.f32 %v1236_v46, %v1232_v42  ;;  %v1374_v45 = vmul.f32 %v2181_v3, %v2283_v0 }
 0x175   : > { %v1324_v19 = vrot.slane %v1323_v36, 2  ;;  %v1330_v62 = vadd.f32 %v1329_v25, %v1328_v23  ;;  %v1378_v34 = vmul.f32 %v2181_v3, %v2311_v18  ;;  %v1381_v58 = vmul.f32 %v2459_v41, %v1313_v47 }
 0x176   : > { %v1338_v48 = vrot.slane %v1337_v60, 2  ;;  %v1343_v27 = vrot.slane %v1342_v7, 4  ;;  %v1382_v20 = vmul.f32 %v2181_v3, %v1320_v12  ;;  %v1405_v49 = vsel %vm1404_vm2, %v1403_v8, %v2286_v24  ;;  %v1651_v12 = vld [vmem:[#allocation2] ss:$0 sm:$0xff] }
 0x177   : > { %v1325_v63 = vadd.f32 %v1324_v19, %v1323_v36  ;;  %v1331_v16 = vrot.slane %v1330_v62, 2  ;;  %v1406_v22 = vrot.slane %v1379_v40, 6  ;;  %v1413_v0 = vsel %vm1404_vm2, %v1412_v44, %v2290_v51 }
 0x178   : > { %v1339_v18 = vadd.f32 %v1338_v48, %v1337_v60  ;;  %v1344_v54 = vadd.f32 %v1343_v27, %v1342_v7  ;;  %v1414_v57 = vrot.slane %v1380_v15, 6  ;;  %v1418_v17 = vrot.slane %v2307_v43, 7  ;;  %v2461_v60 = vld [vmem:[#allocation22_spill] sm:$0xff] }
 0x179   : > { %v1326_v61 = vrot.slane %v1325_v63, 1  ;;  %v1332_v37 = vadd.f32 %v1331_v16, %v1330_v62  ;;  %v1408_v29 = vsel %vm1407_vm3, %v1406_v22, %v1405_v49  ;;  %v1420_v30 = vrot.slane %v1381_v58, 6 }
 0x17a   : > { %v1340_v42 = vrot.slane %v1339_v18, 1  ;;  %v1345_v24 = vrot.slane %v1344_v54, 2  ;;  %v1415_v8 = vsel %vm1407_vm3, %v1414_v57, %v1413_v0  ;;  %v1419_v11 = vsel %vm1404_vm2, %v1418_v17, %v1373_v1 }
 0x17b   : > { %v1327_v9 = vadd.f32 %v1326_v61, %v1325_v63  ;;  %v1333_v35 = vrot.slane %v1332_v37, 1  ;;  %v1421_v51 = vsel %vm1407_vm3, %v1420_v30, %v1419_v11  ;;  %v1424_v44 = vrot.slane %v1378_v34, 7 }
 0x17c   : > { %v1346_v21 = vadd.f32 %v1345_v24, %v1344_v54  ;;  %v1341_v50 = vadd.f32 %v1340_v42, %v1339_v18  ;;  %v1426_v32 = vrot.slane %v1382_v20, 6  ;;  %v2460_v1 = vlaneseq }
 0x17d   : > { %v1334_v43 = vadd.f32 %v1333_v35, %v1332_v37  ;;  %v1383_v33 = vmul.f32 %v2175_v6, %v1327_v9  ;;  %v1425_v39 = vsel %vm1404_vm2, %v1424_v44, %v1374_v45  ;;  %v1892_v7 = vmov 0.0  }
 0x17e   : > { %v1347_v10 = vrot.slane %v1346_v21, 1  ;;  %v1385_v38 = vmul.f32 %v2459_v41, %v1341_v50  ;;  %v1427_v26 = vsel %vm1407_vm3, %v1426_v32, %v1425_v39  ;;  %v1453_v15 = vand.u32 127, %v2460_v1 }
 0x17f   : > { %v1384_v13 = vmul.f32 %v2177_v5, %v1334_v43  ;;  %v1409_v2 = vrot.slane %v1383_v33, 5 }
 0x180   : > { %v1348_v53 = vadd.f32 %v1347_v10, %v1346_v21  ;;  %v1422_v31 = vrot.slane %v1385_v38, 5  ;;  %vm1456_vm5 = vcmp.eq.s32.totalorder %v1453_v15, %v2461_v60 }
 0x181   : > { %v1411_v55 = vsel %vm1410_vm4, %v1409_v2, %v1408_v29  ;;  %v1416_v14 = vrot.slane %v1384_v13, 5  ;;  %v1652_v45 = vsel %vm1456_vm5, 1.0, %v1892_v7 }
 0x182   : > { %v1386_v28 = vmul.f32 %v2181_v3, %v1348_v53  ;;  %v1423_v47 = vsel %vm1410_vm4, %v1422_v31, %v1421_v51  ;;  %v1434_v56 = vsel %vm409_vm0, %v1411_v55, 0.0 }
 0x183   : > { %v1417_v59 = vsel %vm1410_vm4, %v1416_v14, %v1415_v8  ;;  %v1437_v52 = vsel %vm409_vm0, %v1423_v47, 0.0 }
 0x184   : > { %v1428_v6 = vrot.slane %v1386_v28, 5  ;;  %v1435_v23 = vsel %vm409_vm0, %v1417_v59, 0.0 }
 0x185   : > { %v1436_v41 = vadd.f32 %v1435_v23, %v1434_v56 }
 0x186   : > { %v1429_v40 = vsel %vm1410_vm4, %v1428_v6, %v1427_v26 }
 0x187   : > { %v1438_v4 = vadd.f32 %v1437_v52, %v1436_v41  ;;  %v1439_v5 = vsel %vm409_vm0, %v1429_v40, 0.0 }
 0x189   : > { %v1440_v46 = vadd.f32 %v1439_v5, %v1438_v4 }
 0x18b   : > { %1441 = vadd.xlane.f32.xlu0 %v1440_v46 }
 0x214   : > { %v1442_v36 = vpop.xlane.xlu0 %1441 }
 0x215   : > { %v1443_v3 = vmul.f32 0.00390625, %v1442_v36 }
 0x217   : > { %v1451_v25 = vadd.f32 %v1651_v12, %v1443_v3 }
 0x219   : > { %1461 = vperm.xlu0 %1711, %v1451_v25  }
 0x294   : > { %v1462_v19 = vpop.permute.xlu0 %1461 }
 0x295   : > { %v1464_v62 = vmul.f32 %v1652_v45, %v1462_v19 }
 0x297   : > { %v1465_v34 = vsel %vm409_vm0, %v1464_v62, 0.0 }
 0x298   : > { %v1466_v58 = vrot.slane %v1465_v34, 4 }
 0x29a   : > { %v1467_v48 = vadd.f32 %v1466_v58, %v1465_v34 }
 0x29c   : > { %v1468_v27 = vrot.slane %v1467_v48, 2 }
 0x29e   : > { %v1469_v20 = vadd.f32 %v1468_v27, %v1467_v48 }
 0x2a0   : > { %v1470_v49 = vrot.slane %v1469_v20, 1 }
 0x2a2   : > { %v1471_v63 = vadd.f32 %v1470_v49, %v1469_v20 }
 0x2a4   : > { %1472 = vst [vmem:[%s236_s9] sm:$0x1] %v1471_v63 }
 0x2a5   : > { %1835 = shalt.err (!%p1832_p0)
}
 0x2a6   : > { %s1836_s18 = scalar_lea.hbm %s1484_s13, 16  ;;  %s1840_s26 = scalar_lea.hbm %s2411_s5, 32 }
 0x2a7   : > { %p1837_p1 = scmp.ne.s32.totalorder %s1484_s13, %s1836_s18  ;;  %p1841_p4 = scmp.lt.s32.totalorder %s1484_s13, %s2411_s5 }
 0x2a8   : > { %p1842_p7 = scmp.lt.s32.totalorder %s1840_s26, %s1836_s18 }
 0x2a9   : > { %p1838_p2 = pnand %p1837_p1, %p1965_p5 }
 0x2aa   : > { %p1843_p6 = por %p1842_p7, %p1841_p4 }
 0x2ab   : > { %p1839_p3 = pneg %p1838_p2 }
 0x2ad   : > { %p1844_p8 = pnand %p1843_p6, %p1839_p3 }
 0x2af   : > { %1847 = shalt.err (!%p1844_p8)
}
 0x2b0   : > { %1661 = dma.vmem_to_hbm [thread:$0]  (%p1965_p5), %s1487_s10, 16, %s1484_s13, %s1474_s14  }
 0x2b1 PF: > { %p1673_p9 = scmp.ge.s32.totalorder %s1886_s23, 2  ;;  %s1498_s7 = sand.u32 1, %s1874_s20  }
 0x2b2   : > { %p2462_p10 = scmp.ne.s32.totalorder %s2420_s30, 0  ;;  %s1499_s8 = scalar_lea.sflag [#allocation5], %s1498_s7 }
 0x2b4   : > { %p1668_p11 = pnand %p1673_p9, %p2462_p10 }
 0x2b6   : > { %p1669_p12 = pneg %p1668_p11 }
 0x2b8   : > { %1869 = dma.done.wait (%p1669_p12), %s1499_s8, 16  }
 0x2b9   : > { %1871 = vsyncadd (%p1669_p12), %s1499_s8, 4294967280  ;;  %p18_p13 = scmp.ge.s32.totalorder %s1952_s25, 4   ;;  %s2463_s20 = smov %s1878_s21 }
 0x2ba   : > { %s2464_s21 = smov %s1882_s22  ;;  %s2465_s22 = smov %s1963_s28 }
 0x2bb   : > { %s2466_s23 = smov %s1952_s25  ;;  %20 = sbr.rel (!%p18_p13) target bundleno = 7 (0x7), region = 82 }
 0x2c0   :  { %1503 = vsyncpa [#allocation4], 1 }
 0x2c1   :  { %1505 = vsyncpa [#allocation4 + $0x1], 1 }
 0x2c2   :  { %1506 = vsyncpa [#allocation5], 1 }
 0x2c3   :  { %1508 = vsyncpa [#allocation5 + $0x1], 1 }

</bundles_post_ra>
